<compile_context>
chip_gen: v7x
topology: tpu7x:2x2x1
jax: 0.10.0
libtpu: 0.0.40
codegen_flags: <defaults>
</compile_context>

<pallas_src>
import math

import jax
import jax.numpy as jnp
from jax.experimental import pallas as pl
from jax.experimental.pallas import tpu as pltpu

_LANES = 1024      # lane-dense slab width (multiple of 128)
_SUBLANES = 8


def _gelu_exact_kernel(x_ref, o_ref):
    x = x_ref[...].astype(jnp.float32)
    inv_sqrt2 = jnp.float32(1.0 / math.sqrt(2.0))
    y = 0.5 * x * (1.0 + jax.lax.erf(x * inv_sqrt2))
    o_ref[...] = y.astype(o_ref.dtype)


def _gelu_approx_kernel(x_ref, o_ref):
    x = x_ref[...].astype(jnp.float32)
    y = x * jax.nn.sigmoid(jnp.float32(1.702) * x)
    o_ref[...] = y.astype(o_ref.dtype)


def _cdiv(a, b):
    return -(-a // b)


def _round_up(a, b):
    return _cdiv(a, b) * b


def _physical_vmem_bytes():
    try:
        return int(pltpu.get_tpu_info().vmem_capacity_bytes)
    except Exception:
        return 64 * 1024 * 1024  # conservative default (v7x per-TensorCore)


def _choose_block_rows(rows, itemsize):
    """Pick block rows: a multiple of 8, sized by a VMEM byte budget, and
    yielding >= 2 grid steps when the input is large enough (keeps both v7x
    TensorCores busy and the DMA pipeline full)."""
    phys_vmem = _physical_vmem_bytes()
    # Keep 2 input + 2 output double-buffers comfortably inside scoped VMEM
    # on every generation; ~4 MiB blocks already sit at ~85%+ of HBM roofline.
    budget = min(4 * 1024 * 1024, phys_vmem // 16)
    cap = max(_SUBLANES,
              (budget // (_LANES * itemsize)) // _SUBLANES * _SUBLANES)
    if rows <= _SUBLANES:
        return rows  # single tiny block == full (padded) array
    half = _round_up(_cdiv(rows, 2), _SUBLANES)  # guarantees grid >= 2
    return max(_SUBLANES, min(cap, half))


def gelu_pallas(x, use_approx: bool = False, donate: bool = False):
    """Elementwise GELU via a Pallas TPU kernel. Works for any input rank."""
    orig_shape = x.shape
    dtype = x.dtype
    flat = x.reshape(-1)
    n = flat.shape[0]
    if n == 0:
        return x

    itemsize = jnp.dtype(dtype).itemsize
    rows = _cdiv(n, _LANES)
    block_rows = _choose_block_rows(rows, itemsize)
    padded_rows = _round_up(rows, block_rows)
    padded_n = padded_rows * _LANES

    if padded_n != n:
        flat = jnp.pad(flat, (0, padded_n - n))
    x2 = flat.reshape(padded_rows, _LANES)

    grid = (padded_rows // block_rows,)
    block_bytes = block_rows * _LANES * itemsize
    # Explicit VMEM limit with headroom over the double-buffered footprint;
    # stays <= 32 MiB (safe even for v7x's 64 MiB physical VMEM).
    vmem_limit = int(max(32 * 1024 * 1024, 4 * block_bytes + 8 * 1024 * 1024))

    kernel = _gelu_approx_kernel if use_approx else _gelu_exact_kernel

    out2 = pl.pallas_call(
        kernel,
        out_shape=jax.ShapeDtypeStruct((padded_rows, _LANES), dtype),
        grid_spec=pltpu.PrefetchScalarGridSpec(
            num_scalar_prefetch=0,
            grid=grid,
            in_specs=[pl.BlockSpec((block_rows, _LANES), lambda i: (i, 0))],
            out_specs=pl.BlockSpec((block_rows, _LANES), lambda i: (i, 0)),
        ),
        compiler_params=pltpu.CompilerParams(
            dimension_semantics=("parallel",),
            vmem_limit_bytes=vmem_limit,
        ),
        input_output_aliases=({0: 0} if donate else {}),
    )(x2)

    out_flat = out2.reshape(-1)
    if padded_n != n:
        out_flat = out_flat[:n]
    return out_flat.reshape(orig_shape)


def gelu_reference(x, use_approx: bool = False):
    xf = x.astype(jnp.float32)
    if use_approx:
        y = xf * jax.nn.sigmoid(1.702 * xf)
    else:
        y = 0.5 * xf * (1.0 + jax.lax.erf(xf / jnp.sqrt(jnp.float32(2.0))))
    return y.astype(x.dtype)


if __name__ == "__main__":
    key = jax.random.PRNGKey(0)
    k1, k2 = jax.random.split(key)

    # Transformer MLP-style activation: (batch=2, seq=8, hidden=32).
    x = jax.random.normal(k1, (2, 8, 32), dtype=jnp.float32)
    # NCHW-style activation to exercise the rank-agnostic path: (2, 4, 16, 16).
    x_nchw = jax.random.normal(k2, (2, 4, 16, 16), dtype=jnp.float32)

    # exact GELU (the F.gelu path)
    y_exact = gelu_pallas(x, use_approx=False)
    jax.block_until_ready(y_exact)
    assert jnp.allclose(y_exact, gelu_reference(x, use_approx=False),
                        atol=1e-5, rtol=1e-5), "exact GELU mismatch"

    # approximate GELU (x * sigmoid(1.702 x) path)
    y_approx = gelu_pallas(x, use_approx=True)
    jax.block_until_ready(y_approx)
    assert jnp.allclose(y_approx, gelu_reference(x, use_approx=True),
                        atol=1e-5, rtol=1e-5), "approx GELU mismatch"

    # 4-D NCHW input through the same kernel
    y_nchw = gelu_pallas(x_nchw, use_approx=False)
    jax.block_until_ready(y_nchw)
    assert jnp.allclose(y_nchw, gelu_reference(x_nchw, use_approx=False),
                        atol=1e-5, rtol=1e-5), "NCHW exact GELU mismatch"

    print("KERNEL_OK")
</pallas_src>

<mosaic_0001>
module attributes {stable_mosaic.version = 11 : i64} {
  func.func @_gelu_exact_kernel(%arg0: i32, %arg1: memref<1x1024xf32, #tpu.memory_space<vmem>>, %arg2: memref<1x1024xf32, #tpu.memory_space<vmem>>) attributes {dimension_semantics = [#tpu.dimension_semantics<parallel>], iteration_bounds = array<i64: 1>, scalar_prefetch = 0 : i64, scratch_operands = 0 : i64, tpu.core_type = #tpu.core_type<tc>, window_params = [{transform_indices = @transform_0, window_bounds = array<i64: 1, 1024>}, {transform_indices = @transform_1, window_bounds = array<i64: 1, 1024>}]} {
    %c0 = arith.constant 0 : index
    %c0_0 = arith.constant 0 : index
    %0 = vector.load %arg1[%c0, %c0_0] : memref<1x1024xf32, #tpu.memory_space<vmem>>, vector<1x1024xf32>
    %cst = arith.constant 5.000000e-01 : f32
    %1 = vector.broadcast %cst : f32 to vector<1x1024xf32>
    %2 = arith.mulf %1, %0 : vector<1x1024xf32>
    %cst_1 = arith.constant 0.707106769 : f32
    %3 = vector.broadcast %cst_1 : f32 to vector<1x1024xf32>
    %4 = arith.mulf %0, %3 : vector<1x1024xf32>
    %5 = math.erf %4 : vector<1x1024xf32>
    %cst_2 = arith.constant 1.000000e+00 : f32
    %6 = vector.broadcast %cst_2 : f32 to vector<1x1024xf32>
    %7 = arith.addf %6, %5 : vector<1x1024xf32>
    %8 = arith.mulf %2, %7 : vector<1x1024xf32>
    %c0_3 = arith.constant 0 : index
    %c0_4 = arith.constant 0 : index
    %9 = vector.load %arg2[%c0_3, %c0_4] : memref<1x1024xf32, #tpu.memory_space<vmem>>, vector<1x1024xf32>
    tpu.vector_store %arg2[%c0_3, %c0_4], %8 {strides = array<i32>} : memref<1x1024xf32, #tpu.memory_space<vmem>>, vector<1x1024xf32>,
    return
  }
  func.func @transform_0(%arg0: i32) -> (i32, i32) {
    %c0_i32 = arith.constant 0 : i32
    %c0_i32_0 = arith.constant 0 : i32
    return %arg0, %c0_i32 : i32, i32
  }
  func.func @transform_1(%arg0: i32) -> (i32, i32) {
    %c0_i32 = arith.constant 0 : i32
    %c0_i32_0 = arith.constant 0 : i32
    return %arg0, %c0_i32 : i32, i32
  }
}

</mosaic_0001>

<bundles_post_ra>
// kernel: tpu_custom_call.1
= control target key start
LH: loop header
LB: loop body
LE: loop exit
PB: predicated region body
PF: predicated region fallthrough
CT: control target
= control target key end

     0   :  { %6 = vsyncpa [#allocation3], 0  ;;  %s131_s0 = inlined_call_operand.hbm [shape: f32[1,1024], index: 0, kind: input, shape index: {}]   ;;  %s132_s1 = inlined_call_operand.hbm [shape: f32[1,1024], index: 1, kind: output, shape index: {}]  }
   0x1   :  { %7 = vsyncpa [#allocation4], 0  ;;  %s95_s6 = smov [#allocation2]   ;;  %s47_s10 = scalar_lea.hbm %s131_s0, 128 }
   0x2   :  { %s14_s7 = sshll.u32 %s95_s6, 4  ;;  %p48_p0 = scmp.ne.s32.totalorder %s131_s0, %s47_s10  ;;  %s15_s7 = int_to_ptr.vmem [resolvable:$true] %s14_s7 }
   0x3   :  { %p51_p1 = scmp.lt.u32.totalorder %s47_s10, %s131_s0 }
   0x5   :  { %p53_p2 = pnand %p51_p1, %p48_p0 }
   0x7   :  { %56 = shalt.err (!%p53_p2)
}
   0x8   :  { %s57_s15 = scalar_lea.vmem %s15_s7, 128  ;;  %p62_p4 = scmp.lt.s32.totalorder %s15_s7, %s15_s7 }
   0x9   :  { %p58_p3 = scmp.ne.s32.totalorder %s15_s7, %s57_s15  ;;  %p63_p5 = scmp.lt.s32.totalorder %s57_s15, %s57_s15 }
   0xb   :  { %p64_p6 = por %p63_p5, %p62_p4 }
   0xd   :  { %p65_p7 = pnand %p64_p6, %p58_p3 }
   0xf   :  { %68 = shalt.err (!%p65_p7)
}
  0x10   :  { %17 = dma.hbm_to_vmem [thread:$0]  %s131_s0, 128, %s15_s7, [#allocation3]  }
  0x11   :  { %91 = dma.done.wait [#allocation3], 128  }
  0x12   :  { %92 = vsyncadd [#allocation3], 4294967168  ;;  %v21_v0 = vld [vmem:[#allocation2] sm:$0xff]  ;;  %s96_s18 = smov [#allocation5]  }
  0x13   :  { %v23_v1 = vmul.f32 0.70710677, %v21_v0  ;;  %v22_v2 = vmul.f32 0.5, %v21_v0  ;;  %s34_s19 = sshll.u32 %s96_s18, 4  ;;  %s35_s19 = int_to_ptr.vmem [resolvable:$true] %s34_s19 }
  0x14   :  { %s69_s20 = scalar_lea.vmem %s35_s19, 128  ;;  %p74_p9 = scmp.lt.s32.totalorder %s35_s19, %s35_s19 }
  0x15   :  { %45 = verf.f32 %v23_v1  ;;  %p70_p8 = scmp.ne.s32.totalorder %s35_s19, %s69_s20  ;;  %p75_p10 = scmp.lt.s32.totalorder %s69_s20, %s69_s20 }
  0x17   :  { %p76_p11 = por %p75_p10, %p74_p9 }
  0x19   :  { %p77_p12 = pnand %p76_p11, %p70_p8 }
  0x1f   :  { %v46_v3 = vpop.eup %45 }
  0x20   :  { %v25_v4 = vadd.f32 1.0, %v46_v3 }
  0x22   :  { %v26_v5 = vmul.f32 %v25_v4, %v22_v2 }
  0x24   :  { %27 = vst [vmem:[#allocation5] sm:$0xff] %v26_v5 }
  0x25   :  { %80 = shalt.err (!%p77_p12)
}
  0x26   :  { %s81_s22 = scalar_lea.hbm %s132_s1, 128 }
  0x27   :  { %p82_p13 = scmp.ne.s32.totalorder %s132_s1, %s81_s22  ;;  %p85_p0 = scmp.lt.u32.totalorder %s81_s22, %s132_s1 }
  0x29   :  { %p87_p1 = pnand %p85_p0, %p82_p13 }
  0x2b   :  { %90 = shalt.err (!%p87_p1)
}
  0x2c   :  { %37 = dma.vmem_to_hbm [thread:$0]  %s35_s19, 128, %s132_s1, [#allocation4]  }
  0x2d   :  { %93 = dma.done.wait [#allocation4], 128  }
  0x2e   :  { %94 = vsyncadd [#allocation4], 4294967168 }
  0x2f   :  { %41 = vsyncpa [#allocation3], 1 }
  0x30   :  { %42 = vsyncpa [#allocation4], 1 }

</bundles_post_ra>
